<compile_context>
chip_gen: v6e
topology: v6e:2x2x1
jax: 0.10.0
libtpu: 0.0.40
codegen_flags: <defaults>
</compile_context>

<pallas_src>
import functools

import jax
import jax.numpy as jnp
from jax.experimental import pallas as pl
from jax.experimental.pallas import tpu as pltpu


def _round_up(x, m):
    return (x + m - 1) // m * m


def _block_spec(shape, index_map, *, buffers=None):
    """BlockSpec with an optional pipeline-depth request.

    Falls back to a plain BlockSpec on JAX versions without pipeline_mode /
    pl.Buffered so the kernel still compiles (just with default buffering).
    """
    if buffers is not None:
        try:
            return pl.BlockSpec(shape, index_map,
                                pipeline_mode=pl.Buffered(buffers))
        except Exception:  # pragma: no cover - older jax
            pass
    return pl.BlockSpec(shape, index_map)


def _patch_proj_kernel(x_ref, w_ref, b_ref, o_ref):
    # x_ref: (TM, K)  bf16 flattened-patch tile (streamed over M)
    # w_ref: (K, TN)  bf16 reshaped conv weight (resident; streamed over N)
    # b_ref: (1, TN)  f32 conv bias
    # o_ref: (TM, TN) out_dtype
    acc = jnp.dot(x_ref[...], w_ref[...], preferred_element_type=jnp.float32)
    o_ref[...] = (acc + b_ref[...]).astype(o_ref.dtype)


def _vmem_capacity_bytes():
    try:
        return int(pltpu.get_tpu_info().vmem_capacity_bytes)
    except Exception:
        return 64 * 1024 * 1024  # conservative: v7x per-TensorCore VMEM


def _choose_tiling(M, K, E, in_bytes, out_bytes):
    """Pick (tm, tn, vmem_limit) consistently with the chip's VMEM size."""
    vmem = _vmem_capacity_bytes()
    if vmem > 96 * 1024 * 1024:          # v5e / v6e: 128 MiB per core
        budget, limit, tm_cap = 52 << 20, 96 << 20, 4096
    else:                                # v7x: 64 MiB per core
        budget, limit, tm_cap = 26 << 20, 40 << 20, 2048

    # N tiling only as a fallback for very large resident weights, and only
    # when E is 128-aligned so every weight/output block stays lane-dense.
    tn = E
    if E % 128 == 0 and K * E * in_bytes > budget // 3:
        tn = (budget // 3) // (K * in_bytes) // 128 * 128
        tn = min(max(tn, 128), E)

    # Conservative residency: count weight/bias double-buffered even though we
    # request Buffered(1) (covers the fallback path on older JAX).
    resident = 2 * (K * tn * in_bytes + tn * 4)
    per_row = 2 * (K * in_bytes + tn * out_bytes)   # double-buffered in + out
    tm = max((budget - resident) // max(per_row, 1), 128)
    tm = min(tm, tm_cap)
    tm = max((tm // 128) * 128, 128)                # MXU-friendly M fill
    if M <= tm:
        tm = M                                      # single full-extent block
    return tm, tn, limit


@functools.partial(jax.jit, static_argnames=("patch_size", "stride", "out_dtype"))
def patch_embed_forward(x, weight, bias, *, patch_size, stride,
                        out_dtype=jnp.bfloat16):
    """Equivalent of PatchEmbed_new.forward (use_tAPE=False).

    x:      (B, C, H, W)   -- NCHW, like the PyTorch module
    weight: (E, C, ph, pw) -- Conv2d weight
    bias:   (E,)           -- Conv2d bias
    returns (B, num_patches, E) in out_dtype (pass jnp.float32 for the exact
    module output dtype; bf16 default halves output HBM traffic).
    """
    B, C, H, W = x.shape
    E = weight.shape[0]
    ph, pw = patch_size
    sh, sw = stride
    # Non-overlapping patches (kernel_size == stride), the module's default.
    assert (ph, pw) == (sh, sw), "kernel requires stride == patch_size"
    h, w = H // ph, W // pw
    num_patches = h * w

    # --- patch extraction (matches Conv2d window ordering C, ph, pw) -------
    # Materialised once by XLA as a contiguous bf16 (M, K) matrix.
    patches = x.reshape(B, C, h, ph, w, pw)
    patches = patches.transpose(0, 2, 4, 1, 3, 5)
    patches = patches.reshape(B * num_patches, C * ph * pw).astype(jnp.bfloat16)
    M, K = patches.shape

    # Conv2d weight (E, C, ph, pw) -> (K, E) bf16; bias -> (1, E) f32.
    w2d = weight.reshape(E, K).T.astype(jnp.bfloat16)
    b2d = bias.astype(jnp.float32).reshape(1, E)

    # Align K to 128 (lane-dense patch loads, full MXU K passes) only when the
    # zero-padding overhead is small (<= 1/8 extra traffic).
    K_pad = _round_up(K, 128)
    if K_pad != K and (K_pad - K) * 8 <= K:
        patches = jnp.pad(patches, ((0, 0), (0, K_pad - K)))
        w2d = jnp.pad(w2d, ((0, K_pad - K), (0, 0)))
        K = K_pad

    in_bytes = 2
    out_bytes = jnp.dtype(out_dtype).itemsize
    tm, tn, vmem_limit = _choose_tiling(M, K, E, in_bytes, out_bytes)
    grid = (pl.cdiv(E, tn), pl.cdiv(M, tm))   # M innermost: weight stays put

    out = pl.pallas_call(
        _patch_proj_kernel,
        out_shape=jax.ShapeDtypeStruct((M, E), out_dtype),
        grid=grid,
        in_specs=[
            _block_spec((tm, K), lambda n, m: (m, 0)),               # patches
            _block_spec((K, tn), lambda n, m: (0, n), buffers=1),    # weight
            _block_spec((1, tn), lambda n, m: (0, n), buffers=1),    # bias
        ],
        out_specs=pl.BlockSpec((tm, tn), lambda n, m: (m, n)),
        compiler_params=pltpu.CompilerParams(
            dimension_semantics=("parallel", "parallel"),
            vmem_limit_bytes=vmem_limit,
        ),
        cost_estimate=pl.CostEstimate(
            flops=2 * M * K * E,
            bytes_accessed=(M * K * in_bytes + K * E * in_bytes + E * 4
                            + M * E * out_bytes),
            transcendentals=0,
        ),
    )(patches, w2d, b2d)

    # (B*num_patches, E) -> (B, num_patches, E)
    # == Conv2d output .flatten(2).transpose(1, 2).
    return out.reshape(B, num_patches, E)


def reference_forward(x, weight, bias, *, stride):
    """Pure-JAX reference using a real conv (for correctness check)."""
    y = jax.lax.conv_general_dilated(
        x, weight, window_strides=stride, padding="VALID",
        dimension_numbers=("NCHW", "OIHW", "NCHW"),
    ) + bias.reshape(1, -1, 1, 1)
    B, E, hh, ww = y.shape
    return y.reshape(B, E, hh * ww).transpose(0, 2, 1)


if __name__ == "__main__":
    # Small shapes consistent with the module: img 16x16, patch 4x4, stride 4,
    # in_chans=4, embed_dim=32, batch=2 -> 16 patches, K = 4*4*4 = 64.
    B, C, H, W = 2, 4, 16, 16
    patch_size = (4, 4)
    stride = (4, 4)
    E = 32

    key = jax.random.PRNGKey(0)
    kx, kw, kb = jax.random.split(key, 3)
    x = jax.random.normal(kx, (B, C, H, W), dtype=jnp.float32)
    # Deterministic synthetic parameter init (not a checkpoint load).
    fan_in = C * patch_size[0] * patch_size[1]
    weight = jax.random.normal(kw, (E, C, patch_size[0], patch_size[1]),
                               dtype=jnp.float32) * (1.0 / fan_in) ** 0.5
    bias = jax.random.normal(kb, (E,), dtype=jnp.float32) * 0.01

    out = patch_embed_forward(x, weight, bias,
                              patch_size=patch_size, stride=stride)
    out = jax.block_until_ready(out)

    ref = reference_forward(x, weight, bias, stride=stride)
    assert out.shape == (B, (H // patch_size[0]) * (W // patch_size[1]), E)
    # bf16 MXU inputs + bf16 output (f32 accumulate): not bit-exact vs the f32
    # conv reference, hence the loose tolerance.
    assert jnp.allclose(out.astype(jnp.float32), ref, atol=5e-2, rtol=5e-2)

    print("KERNEL_OK")
</pallas_src>

<mosaic_0001>
module attributes {stable_mosaic.version = 11 : i64} {
  func.func @_patch_proj_kernel(%arg0: i32, %arg1: i32, %arg2: memref<32x64xbf16, #tpu.memory_space<vmem>>, %arg3: memref<64x32xbf16, #tpu.memory_space<vmem>>, %arg4: memref<1x32xf32, #tpu.memory_space<vmem>>, %arg5: memref<32x32xbf16, #tpu.memory_space<vmem>>) attributes {dimension_semantics = [#tpu.dimension_semantics<parallel>, #tpu.dimension_semantics<parallel>], iteration_bounds = array<i64: 1, 1>, scalar_prefetch = 0 : i64, scratch_operands = 0 : i64, tpu.core_type = #tpu.core_type<tc>, window_params = [{transform_indices = @transform_0, window_bounds = array<i64: 32, 64>}, {pipeline_mode = #tpu.pipeline_mode<synchronous>, transform_indices = @transform_1, window_bounds = array<i64: 64, 32>}, {pipeline_mode = #tpu.pipeline_mode<synchronous>, transform_indices = @transform_2, window_bounds = array<i64: 1, 32>}, {transform_indices = @transform_3, window_bounds = array<i64: 32, 32>}]} {
    %c0 = arith.constant 0 : index
    %c0_0 = arith.constant 0 : index
    %0 = vector.load %arg2[%c0, %c0_0] : memref<32x64xbf16, #tpu.memory_space<vmem>>, vector<32x64xbf16>
    %c0_1 = arith.constant 0 : index
    %c0_2 = arith.constant 0 : index
    %1 = vector.load %arg3[%c0_1, %c0_2] : memref<64x32xbf16, #tpu.memory_space<vmem>>, vector<64x32xbf16>
    %cst = arith.constant dense<0.000000e+00> : vector<32x32xf32>
    %2 = tpu.matmul %0, %1, %cst {dimension_numbers = #tpu.dot_dimension_numbers<[1], [0], [0], [1], [0, 0, 1, 1], [], []>} : vector<32x64xbf16>, vector<64x32xbf16>, vector<32x32xf32> -> vector<32x32xf32>
    %c0_3 = arith.constant 0 : index
    %c0_4 = arith.constant 0 : index
    %3 = vector.load %arg4[%c0_3, %c0_4] : memref<1x32xf32, #tpu.memory_space<vmem>>, vector<1x32xf32>
    %4 = vector.broadcast %3 : vector<1x32xf32> to vector<32x32xf32>
    %5 = arith.addf %2, %4 : vector<32x32xf32>
    %6 = arith.truncf %5 : vector<32x32xf32> to vector<32x32xbf16>
    %c0_5 = arith.constant 0 : index
    %c0_6 = arith.constant 0 : index
    %7 = vector.load %arg5[%c0_5, %c0_6] : memref<32x32xbf16, #tpu.memory_space<vmem>>, vector<32x32xbf16>
    tpu.vector_store %arg5[%c0_5, %c0_6], %6 {strides = array<i32>} : memref<32x32xbf16, #tpu.memory_space<vmem>>, vector<32x32xbf16>,
    return
  }
  func.func @transform_0(%arg0: i32, %arg1: i32) -> (i32, i32) {
    %c0_i32 = arith.constant 0 : i32
    %c0_i32_0 = arith.constant 0 : i32
    return %arg1, %c0_i32 : i32, i32
  }
  func.func @transform_1(%arg0: i32, %arg1: i32) -> (i32, i32) {
    %c0_i32 = arith.constant 0 : i32
    %c0_i32_0 = arith.constant 0 : i32
    return %c0_i32, %arg0 : i32, i32
  }
  func.func @transform_2(%arg0: i32, %arg1: i32) -> (i32, i32) {
    %c0_i32 = arith.constant 0 : i32
    %c0_i32_0 = arith.constant 0 : i32
    return %c0_i32, %arg0 : i32, i32
  }
  func.func @transform_3(%arg0: i32, %arg1: i32) -> (i32, i32) {
    %c0_i32 = arith.constant 0 : i32
    return %arg1, %arg0 : i32, i32
  }
}

</mosaic_0001>

<bundles_post_ra>
// kernel: patch_embed_forward.1
= control target key start
LH: loop header
LB: loop body
LE: loop exit
PB: predicated region body
PF: predicated region fallthrough
CT: control target
= control target key end

     0   :  { %vm69_vm0 = vcmask 523264   ;;  %s279_s0 = inlined_call_operand.vmem [shape: bf16[32,64], index: 0, kind: input, shape index: {}]   ;;  %s280_s1 = inlined_call_operand.vmem [shape: bf16[64,32], index: 1, kind: input, shape index: {}]   ;;  %s281_s2 = inlined_call_operand.vmem [shape: f32[1,32], index: 2, kind: input, shape index: {}]   ;;  %s282_s3 = inlined_call_operand.hbm [shape: bf16[32,32], index: 3, kind: output, shape index: {}]  }
   0x1   :  { %v200_v0 = vld [vmem:[%s280_s1 + $0x18] sm:$0xff]   ;;  %v201_v1 = vld [vmem:[%s280_s1 + $0x10] sm:$0xff]   ;;  %v202_v2 = vld [vmem:[%s280_s1 + $0x8] sm:$0xff]  }
   0x2   :  { %185 = vmatprep.subr.bf16.mxu0 %v200_v0  ;;  %v204_v3 = vld [vmem:[%s279_s0] sm:$0xff]  }
   0x3   :  { %186 = vmatpush3.bf16.msra.mxu0 %v200_v0  ;;  %193 = vmatprep.mubr.msk.bf16.mxu0 %vm69_vm0, %v204_v3 }
   0x4   :  { %187 = vmatprep.subr.bf16.mxu0 %v201_v1 }
   0x5   :  { %8 = vsyncpa [#allocation3], 0  ;;  %v203_v4 = vld [vmem:[%s280_s1] sm:$0xff]   ;;  %v205_v5 = vld [vmem:[%s279_s0 + $0x8] sm:$0xff]   ;;  %vm141_vm1 = vcmask 257024   ;;  %s228_s1 = smov [#allocation2]  }
   0x6   :  { %v162_v6 = vld [vmem:[%s281_s2] ss:$0 sm:$0xff]  ;;  %s151_s26 = sshll.u32 %s228_s1, 4  ;;  %s152_s26 = int_to_ptr.vmem [resolvable:$true] %s151_s26 }
   0x7   :  { %188 = vmatpush3.bf16.msra.mxu0 %v201_v1  ;;  %s206_s0 = scalar_lea.vmem %s152_s26, 256  ;;  %p211_p1 = scmp.lt.s32.totalorder %s152_s26, %s152_s26 }
   0x8   :  { %189 = vmatprep.subr.bf16.mxu0 %v202_v2  ;;  %p207_p0 = scmp.ne.s32.totalorder %s152_s26, %s206_s0  ;;  %p212_p2 = scmp.lt.s32.totalorder %s206_s0, %s206_s0 }
   0xa   :  { %p213_p3 = por %p212_p2, %p211_p1 }
   0xb   :  { %190 = vmatpush3.bf16.msra.mxu0 %v202_v2 }
   0xc   :  { %191 = vmatprep.subr.bf16.mxu0 %v203_v4  ;;  %p214_p4 = pnand %p213_p3, %p207_p0 }
   0xf   :  { %192 = vmatpush3.bf16.msra.mxu0 %v203_v4 }
  0x12   :  { %194 = vmatmul.mubr.msk.bf16.vlgmr.msra.gmra.mxu0 %vm69_vm0, %v205_v5 }
  0xd2   :  { %v195_v7 = vpop.f32.mrf.mxu0 }
  0xd3   :  { %v119_v8 = vadd.f32 %v195_v7, %v162_v6 }
  0xd4   :  { %v110_v9 = vpop.f32.mrf.mxu0 }
  0xd5   :  { %v177_v10 = vpack.c.bf16 %v119_v8, %v119_v8  ;;  %v111_v11 = vadd.f32 %v162_v6, %v110_v9 }
  0xd6   :  { %v196_v12 = vpop.f32.mrf.mxu0 }
  0xd7   :  { %144 = vst.msk [vmem:[#allocation2 + $0x8] sm:$0xf] %vm141_vm1, %v177_v10  ;;  %v175_v13 = vpack.c.bf16 %v111_v11, %v111_v11  ;;  %v122_v14 = vadd.f32 %v196_v12, %v162_v6 }
  0xd8   :  { %v113_v15 = vpop.f32.mrf.mxu0 }
  0xd9   :  { %142 = vst.msk [vmem:[#allocation2] sm:$0xf] %vm141_vm1, %v175_v13  ;;  %v178_v16 = vpack.c.bf16 %v122_v14, %v122_v14  ;;  %v114_v17 = vadd.f32 %v162_v6, %v113_v15 }
  0xdb   :  { %145 = vst.msk [vmem:[#allocation2 + $0xc] sm:$0xf] %vm141_vm1, %v178_v16  ;;  %v176_v18 = vpack.c.bf16 %v114_v17, %v114_v17 }
  0xdd   :  { %143 = vst.msk [vmem:[#allocation2 + $0x4] sm:$0xf] %vm141_vm1, %v176_v18 }
  0xde   :  { %217 = shalt.err (!%p214_p4)
}
  0xdf   :  { %s229_s2 = smov 64   ;;  %s230_s27 = smov 4  }
  0xe0   :  { %157 = dma.vmem_to_hbm [thread:$0]  %s152_s26, 256, %s282_s3, [#allocation3], %s229_s2, %s229_s2, %s230_s27  }
  0xe1   :  { %226 = dma.done.wait [#allocation3], 256  }
  0xe2   :  { %227 = vsyncadd [#allocation3], 4294967040 }
  0xe3   :  { %161 = vsyncpa [#allocation3], 1 }

</bundles_post_ra>
